<compile_context>
chip_gen: v6e
topology: v6e:2x2x1
jax: 0.10.0
libtpu: 0.0.40
codegen_flags: <defaults>
</compile_context>

<pallas_src>
import functools

import jax
import jax.numpy as jnp
import numpy as np
from jax import lax
from jax.experimental import pallas as pl
from jax.experimental.pallas import tpu as pltpu

_SUBL = 32                      # sublane rows per group (multiple of f32/bf16 native tile)
_LANES = 128                    # lane width
_GROUP_ELEMS = _SUBL * _LANES   # 4096 elements per row-group
_DEFAULT_TARGET_GROUPS = 256    # 256 * 4096 * 4B = 4 MiB (f32) per input per grid step
_UNROLL = 4                     # fori_loop unroll (LLO scheduling visibility)
_VMEM_HEADROOM = 6 << 20        # compiler temporaries / internal scratch
_VMEM_FLOOR = 32 << 20
_VMEM_CAP = 50 << 20            # stay comfortably under v7x's 64 MiB physical VMEM


def _mae_partials_kernel(jre_ref, jen_ref, jf_ref, gt_ref, out_ref, *,
                         block_groups, rem_groups):
    """One grid step: streaming partial sums of the four abs-error maps.

    in refs : (block_groups, 32, 128), native dtype (upcast to f32 in vregs)
    out ref : (1, 4, 32, 128) float32 partial sums over this step's groups:
      [0] sum|Jre-gt|  [1] sum|Jen-gt|  [2] sum min(|Jre-gt|,|Jen-gt|)  [3] sum|Jf-gt|
    """

    def accumulate(n_groups):
        def body(g, carry):
            a0, a1, a2, a3 = carry
            gt = gt_ref[g].astype(jnp.float32)
            d0 = jnp.abs(jre_ref[g].astype(jnp.float32) - gt)
            d1 = jnp.abs(jen_ref[g].astype(jnp.float32) - gt)
            d3 = jnp.abs(jf_ref[g].astype(jnp.float32) - gt)
            return (a0 + d0, a1 + d1, a2 + jnp.minimum(d0, d1), a3 + d3)

        zero = jnp.zeros((_SUBL, _LANES), jnp.float32)
        a0, a1, a2, a3 = lax.fori_loop(0, n_groups, body, (zero, zero, zero, zero),
                                       unroll=min(_UNROLL, n_groups))
        out_ref[0, 0] = a0
        out_ref[0, 1] = a1
        out_ref[0, 2] = a2
        out_ref[0, 3] = a3

    if rem_groups == 0:
        # Uniform grid: every step runs the identical unmasked loop.
        accumulate(block_groups)
    else:
        # Ragged last block: its valid-group count is known at trace time, so
        # it just runs the same loop with a shorter *static* trip count — the
        # OOB tail of the partial block is never read and no masks are needed.
        is_last = pl.program_id(0) == pl.num_programs(0) - 1

        @pl.when(jnp.logical_not(is_last))
        def _():
            accumulate(block_groups)

        @pl.when(is_last)
        def _():
            accumulate(rem_groups)


def _as_groups(x):
    """Flatten and view as (G, 32, 128).

    Zero-copy whenever numel % 4096 == 0 (pure reshape of a contiguous array).
    Otherwise one padding copy per input is unavoidable (custom-call operands
    cannot alias a sub-buffer); padded zeros contribute exactly 0 to every sum.
    """
    flat = x.reshape(-1)
    pad = (-flat.shape[0]) % _GROUP_ELEMS
    if pad:
        flat = jnp.pad(flat, (0, pad))
    return flat.reshape(-1, _SUBL, _LANES)


def _pick_block_groups(total_groups, target):
    """Largest divisor of total_groups <= target; ragged fallback otherwise."""
    target = max(1, min(int(target), int(total_groups)))
    divisor = 1
    for d in range(target, 0, -1):
        if total_groups % d == 0:
            divisor = d
            break
    if divisor * 2 >= target:            # reasonable divisor -> fully uniform grid
        return divisor, 0
    return target, total_groups % target  # statically-known ragged last block


@functools.partial(jax.jit, static_argnames=("target_block_groups",))
def mae_loss_means(jre, jen, jf, gt, *, target_block_groups=_DEFAULT_TARGET_GROUPS):
    """Returns a (4,) float32 array with the four mean-abs-error losses."""
    n_elems = jre.size  # original (unpadded) element count, static under jit
    a, b, c, g = (_as_groups(t) for t in (jre, jen, jf, gt))

    total_groups = a.shape[0]
    bg, rem_groups = _pick_block_groups(total_groups, target_block_groups)
    num_blocks = pl.cdiv(total_groups, bg)

    in_spec = pl.BlockSpec((bg, _SUBL, _LANES), lambda i: (i, 0, 0))
    out_spec = pl.BlockSpec((1, 4, _SUBL, _LANES), lambda i: (i, 0, 0, 0))

    # Scoped-VMEM limit sized to the real double-buffered footprint
    # (inputs stay in native dtype; partial outputs are f32) plus headroom.
    in_bytes = sum(2 * bg * _GROUP_ELEMS * t.dtype.itemsize for t in (a, b, c, g))
    out_bytes = 2 * 4 * _GROUP_ELEMS * 4
    vmem_limit = int(min(max(in_bytes + out_bytes + _VMEM_HEADROOM, _VMEM_FLOOR),
                         _VMEM_CAP))

    kernel = functools.partial(_mae_partials_kernel,
                               block_groups=bg, rem_groups=rem_groups)

    partials = pl.pallas_call(
        kernel,
        out_shape=jax.ShapeDtypeStruct((num_blocks, 4, _SUBL, _LANES), jnp.float32),
        grid=(num_blocks,),
        in_specs=[in_spec, in_spec, in_spec, in_spec],
        out_specs=out_spec,
        compiler_params=pltpu.CompilerParams(
            dimension_semantics=("parallel",),
            vmem_limit_bytes=vmem_limit),
    )(a, b, c, g)

    sums = jnp.sum(partials, axis=(0, 2, 3))  # tiny epilogue cross-lane reduce
    return sums * jnp.float32(1.0 / n_elems)


def test_loss_woAt_forward(img, weight, *, target_block_groups=_DEFAULT_TARGET_GROUPS):
    """Mirrors test_loss_woAt.forward: returns a list of len(weight) floats.

    MS_SSIM and VGG_LOSS are instantiated in the PyTorch __init__ but never
    called in forward, so they do not affect the output.
    """
    Jre, Jen, Jf, gt_image = img
    means = jax.block_until_ready(
        mae_loss_means(Jre, Jen, Jf, gt_image,
                       target_block_groups=target_block_groups))
    means = np.asarray(means)  # single device->host transfer
    loss = [0.0] * len(weight)
    loss[0] = float(means[0])  # mean(|Jre - gt|)
    loss[1] = float(means[1])  # mean(|Jen - gt|)
    loss[2] = float(means[2])  # mean(min(|Jre-gt|, |Jen-gt|))
    loss[3] = float(means[3])  # mean(|Jf - gt|)
    return loss


if __name__ == "__main__":
    key = jax.random.PRNGKey(0)
    weight = [1.0, 1.0, 1.0, 1.0]

    def reference(Jre, Jen, Jf, gt):
        f32 = lambda x: x.astype(jnp.float32)
        d0 = jnp.abs(f32(Jre) - f32(gt))
        d1 = jnp.abs(f32(Jen) - f32(gt))
        d3 = jnp.abs(f32(Jf) - f32(gt))
        return [float(jnp.mean(d0)), float(jnp.mean(d1)),
                float(jnp.mean(jnp.minimum(d0, d1))), float(jnp.mean(d3))]

    # (shape, dtype, target_block_groups) cases exercise:
    #  (1) numel < 4096 (padded single group),
    #  (2) multi-block uniform grid via the divisor pick (6 groups -> bg=3),
    #  (3) ragged statically-sized last block (7 groups -> bg=4, rem=3),
    #  (4) bf16 inputs with in-kernel upcast (and a padded tail),
    #  (5) the default target on a 4096-aligned shape (zero-copy reshape).
    cases = [
        ((2, 3, 16, 16), jnp.float32, _DEFAULT_TARGET_GROUPS),
        ((2, 3, 64, 64), jnp.float32, 4),
        ((1, 7, 64, 64), jnp.float32, 4),
        ((2, 3, 32, 32), jnp.bfloat16, _DEFAULT_TARGET_GROUPS),
        ((2, 3, 128, 128), jnp.float32, _DEFAULT_TARGET_GROUPS),
    ]

    for shape, dtype, tbg in cases:
        key, k1, k2, k3, k4 = jax.random.split(key, 5)
        Jre = jax.random.uniform(k1, shape, jnp.float32).astype(dtype)
        Jen = jax.random.uniform(k2, shape, jnp.float32).astype(dtype)
        Jf = jax.random.uniform(k3, shape, jnp.float32).astype(dtype)
        gt = jax.random.uniform(k4, shape, jnp.float32).astype(dtype)

        loss = test_loss_woAt_forward((Jre, Jen, Jf, gt), weight,
                                      target_block_groups=tbg)
        ref = reference(Jre, Jen, Jf, gt)
        assert all(abs(x - y) < 1e-5 for x, y in zip(loss, ref)), \
            (shape, str(dtype), tbg, loss, ref)

    print("KERNEL_OK")
</pallas_src>

<mosaic_0001>
module attributes {stable_mosaic.version = 11 : i64} {
  func.func @_mae_partials_kernel(%arg0: i32, %arg1: memref<1x32x128xf32, #tpu.memory_space<vmem>>, %arg2: memref<1x32x128xf32, #tpu.memory_space<vmem>>, %arg3: memref<1x32x128xf32, #tpu.memory_space<vmem>>, %arg4: memref<1x32x128xf32, #tpu.memory_space<vmem>>, %arg5: memref<1x4x32x128xf32, #tpu.memory_space<vmem>>) attributes {dimension_semantics = [#tpu.dimension_semantics<parallel>], iteration_bounds = array<i64: 1>, scalar_prefetch = 0 : i64, scratch_operands = 0 : i64, tpu.core_type = #tpu.core_type<tc>, window_params = [{transform_indices = @transform_0, window_bounds = array<i64: 1, 32, 128>}, {transform_indices = @transform_1, window_bounds = array<i64: 1, 32, 128>}, {transform_indices = @transform_2, window_bounds = array<i64: 1, 32, 128>}, {transform_indices = @transform_3, window_bounds = array<i64: 1, 32, 128>}, {transform_indices = @transform_4, window_bounds = array<i64: 1, 4, 32, 128>}]} {
    %cst = arith.constant 0.000000e+00 : f32
    %0 = vector.broadcast %cst : f32 to vector<32x128xf32>
    %c0_i32 = arith.constant 0 : i32
    %1 = arith.index_cast %c0_i32 : i32 to index
    %c0 = arith.constant 0 : index
    %c0_0 = arith.constant 0 : index
    %2 = vector.load %arg4[%1, %c0, %c0_0] : memref<1x32x128xf32, #tpu.memory_space<vmem>>, vector<1x32x128xf32>
    %3 = vector.shape_cast %2 : vector<1x32x128xf32> to vector<32x128xf32>
    %4 = arith.index_cast %c0_i32 : i32 to index
    %c0_1 = arith.constant 0 : index
    %c0_2 = arith.constant 0 : index
    %5 = vector.load %arg1[%4, %c0_1, %c0_2] : memref<1x32x128xf32, #tpu.memory_space<vmem>>, vector<1x32x128xf32>
    %6 = vector.shape_cast %5 : vector<1x32x128xf32> to vector<32x128xf32>
    %7 = arith.subf %6, %3 : vector<32x128xf32>
    %8 = math.absf %7 : vector<32x128xf32>
    %9 = arith.index_cast %c0_i32 : i32 to index
    %c0_3 = arith.constant 0 : index
    %c0_4 = arith.constant 0 : index
    %10 = vector.load %arg2[%9, %c0_3, %c0_4] : memref<1x32x128xf32, #tpu.memory_space<vmem>>, vector<1x32x128xf32>
    %11 = vector.shape_cast %10 : vector<1x32x128xf32> to vector<32x128xf32>
    %12 = arith.subf %11, %3 : vector<32x128xf32>
    %13 = math.absf %12 : vector<32x128xf32>
    %14 = arith.index_cast %c0_i32 : i32 to index
    %c0_5 = arith.constant 0 : index
    %c0_6 = arith.constant 0 : index
    %15 = vector.load %arg3[%14, %c0_5, %c0_6] : memref<1x32x128xf32, #tpu.memory_space<vmem>>, vector<1x32x128xf32>
    %16 = vector.shape_cast %15 : vector<1x32x128xf32> to vector<32x128xf32>
    %17 = arith.subf %16, %3 : vector<32x128xf32>
    %18 = math.absf %17 : vector<32x128xf32>
    %19 = arith.addf %0, %8 : vector<32x128xf32>
    %20 = arith.addf %0, %13 : vector<32x128xf32>
    %21 = arith.minimumf %8, %13 : vector<32x128xf32>
    %22 = arith.addf %0, %21 : vector<32x128xf32>
    %23 = arith.addf %0, %18 : vector<32x128xf32>
    %c1_i32 = arith.constant 1 : i32
    %c0_7 = arith.constant 0 : index
    %c0_8 = arith.constant 0 : index
    %c0_9 = arith.constant 0 : index
    %c0_10 = arith.constant 0 : index
    %24 = vector.load %arg5[%c0_7, %c0_8, %c0_9, %c0_10] : memref<1x4x32x128xf32, #tpu.memory_space<vmem>>, vector<1x1x32x128xf32>
    %25 = vector.shape_cast %24 : vector<1x1x32x128xf32> to vector<32x128xf32>
    %26 = vector.shape_cast %19 : vector<32x128xf32> to vector<1x1x32x128xf32>
    tpu.vector_store %arg5[%c0_7, %c0_8, %c0_9, %c0_10], %26 {strides = array<i32>} : memref<1x4x32x128xf32, #tpu.memory_space<vmem>>, vector<1x1x32x128xf32>,
    %c0_11 = arith.constant 0 : index
    %c1 = arith.constant 1 : index
    %c0_12 = arith.constant 0 : index
    %c0_13 = arith.constant 0 : index
    %27 = vector.load %arg5[%c0_11, %c1, %c0_12, %c0_13] : memref<1x4x32x128xf32, #tpu.memory_space<vmem>>, vector<1x1x32x128xf32>
    %28 = vector.shape_cast %27 : vector<1x1x32x128xf32> to vector<32x128xf32>
    %29 = vector.shape_cast %20 : vector<32x128xf32> to vector<1x1x32x128xf32>
    tpu.vector_store %arg5[%c0_11, %c1, %c0_12, %c0_13], %29 {strides = array<i32>} : memref<1x4x32x128xf32, #tpu.memory_space<vmem>>, vector<1x1x32x128xf32>,
    %c0_14 = arith.constant 0 : index
    %c2 = arith.constant 2 : index
    %c0_15 = arith.constant 0 : index
    %c0_16 = arith.constant 0 : index
    %30 = vector.load %arg5[%c0_14, %c2, %c0_15, %c0_16] : memref<1x4x32x128xf32, #tpu.memory_space<vmem>>, vector<1x1x32x128xf32>
    %31 = vector.shape_cast %30 : vector<1x1x32x128xf32> to vector<32x128xf32>
    %32 = vector.shape_cast %22 : vector<32x128xf32> to vector<1x1x32x128xf32>
    tpu.vector_store %arg5[%c0_14, %c2, %c0_15, %c0_16], %32 {strides = array<i32>} : memref<1x4x32x128xf32, #tpu.memory_space<vmem>>, vector<1x1x32x128xf32>,
    %c0_17 = arith.constant 0 : index
    %c3 = arith.constant 3 : index
    %c0_18 = arith.constant 0 : index
    %c0_19 = arith.constant 0 : index
    %33 = vector.load %arg5[%c0_17, %c3, %c0_18, %c0_19] : memref<1x4x32x128xf32, #tpu.memory_space<vmem>>, vector<1x1x32x128xf32>
    %34 = vector.shape_cast %33 : vector<1x1x32x128xf32> to vector<32x128xf32>
    %35 = vector.shape_cast %23 : vector<32x128xf32> to vector<1x1x32x128xf32>
    tpu.vector_store %arg5[%c0_17, %c3, %c0_18, %c0_19], %35 {strides = array<i32>} : memref<1x4x32x128xf32, #tpu.memory_space<vmem>>, vector<1x1x32x128xf32>,
    return
  }
  func.func @transform_0(%arg0: i32) -> (i32, i32, i32) {
    %c0_i32 = arith.constant 0 : i32
    %c0_i32_0 = arith.constant 0 : i32
    %c0_i32_1 = arith.constant 0 : i32
    return %arg0, %c0_i32, %c0_i32_0 : i32, i32, i32
  }
  func.func @transform_1(%arg0: i32) -> (i32, i32, i32) {
    %c0_i32 = arith.constant 0 : i32
    %c0_i32_0 = arith.constant 0 : i32
    %c0_i32_1 = arith.constant 0 : i32
    return %arg0, %c0_i32, %c0_i32_0 : i32, i32, i32
  }
  func.func @transform_2(%arg0: i32) -> (i32, i32, i32) {
    %c0_i32 = arith.constant 0 : i32
    %c0_i32_0 = arith.constant 0 : i32
    %c0_i32_1 = arith.constant 0 : i32
    return %arg0, %c0_i32, %c0_i32_0 : i32, i32, i32
  }
  func.func @transform_3(%arg0: i32) -> (i32, i32, i32) {
    %c0_i32 = arith.constant 0 : i32
    %c0_i32_0 = arith.constant 0 : i32
    %c0_i32_1 = arith.constant 0 : i32
    return %arg0, %c0_i32, %c0_i32_0 : i32, i32, i32
  }
  func.func @transform_4(%arg0: i32) -> (i32, i32, i32, i32) {
    %c0_i32 = arith.constant 0 : i32
    %c0_i32_0 = arith.constant 0 : i32
    %c0_i32_1 = arith.constant 0 : i32
    %c0_i32_2 = arith.constant 0 : i32
    return %arg0, %c0_i32, %c0_i32_0, %c0_i32_1 : i32, i32, i32, i32
  }
}

</mosaic_0001>

<bundles_post_ra>
// kernel: mae_loss_means.1
= control target key start
LH: loop header
LB: loop body
LE: loop exit
PB: predicated region body
PF: predicated region fallthrough
CT: control target
= control target key end

     0   :  { %s233_s0 = inlined_call_operand.vmem [shape: f32[1,32,128], index: 0, kind: input, shape index: {}]   ;;  %s234_s3 = inlined_call_operand.vmem [shape: f32[1,32,128], index: 3, kind: input, shape index: {}]   ;;  %s235_s1 = inlined_call_operand.vmem [shape: f32[1,32,128], index: 1, kind: input, shape index: {}]   ;;  %s236_s2 = inlined_call_operand.vmem [shape: f32[1,32,128], index: 2, kind: input, shape index: {}]   ;;  %s237_s4 = inlined_call_operand.vmem [shape: f32[1,4,32,128], index: 4, kind: output, shape index: {}]  }
   0x1   :  { %v17_v0 = vld [vmem:[%s234_s3] sm:$0xff]  ;;  %v18_v2 = vld [vmem:[%s234_s3 + $0x8] sm:$0xff]  ;;  %v19_v5 = vld [vmem:[%s234_s3 + $0x10] sm:$0xff] }
   0x2   :  { %v21_v1 = vld [vmem:[%s233_s0] sm:$0xff]  ;;  %v22_v4 = vld [vmem:[%s233_s0 + $0x8] sm:$0xff]  ;;  %v23_v6 = vld [vmem:[%s233_s0 + $0x10] sm:$0xff] }
   0x3   :  { %v25_v3 = vsub.f32 %v21_v1, %v17_v0  ;;  %v26_v7 = vsub.f32 %v22_v4, %v18_v2  ;;  %v27_v8 = vsub.f32 %v23_v6, %v19_v5  ;;  %v20_v9 = vld [vmem:[%s234_s3 + $0x18] sm:$0xff]  ;;  %v33_v11 = vld [vmem:[%s235_s1] sm:$0xff]  ;;  %v34_v15 = vld [vmem:[%s235_s1 + $0x8] sm:$0xff] }
   0x4   :  { %v24_v10 = vld [vmem:[%s233_s0 + $0x18] sm:$0xff]  ;;  %v37_v14 = vsub.f32 %v33_v11, %v17_v0  ;;  %v35_v16 = vld [vmem:[%s235_s1 + $0x10] sm:$0xff]  ;;  %v38_v20 = vsub.f32 %v34_v15, %v18_v2  ;;  %v45_v22 = vld [vmem:[%s236_s2] sm:$0xff] }
   0x5   :  { %v29_v12 = vand.u32 2147483647, %v25_v3  ;;  %v28_v13 = vsub.f32 %v24_v10, %v20_v9  ;;  %v36_v17 = vld [vmem:[%s235_s1 + $0x18] sm:$0xff]  ;;  %v30_v18 = vand.u32 2147483647, %v26_v7  ;;  %v39_v21 = vsub.f32 %v35_v16, %v19_v5  ;;  %v46_v23 = vld [vmem:[%s236_s2 + $0x8] sm:$0xff] }
   0x6   :  { %v31_v19 = vand.u32 2147483647, %v27_v8  ;;  %v41_v25 = vand.u32 2147483647, %v37_v14  ;;  %v40_v26 = vsub.f32 %v36_v17, %v20_v9  ;;  %v49_v27 = vsub.f32 %v45_v22, %v17_v0  ;;  %v47_v28 = vld [vmem:[%s236_s2 + $0x10] sm:$0xff]  ;;  %v48_v29 = vld [vmem:[%s236_s2 + $0x18] sm:$0xff] }
   0x7   :  { %77 = vst [vmem:[%s237_s4] sm:$0xff] %v29_v12  ;;  %v32_v24 = vand.u32 2147483647, %v28_v13  ;;  %78 = vst [vmem:[%s237_s4 + $0x8] sm:$0xff] %v30_v18  ;;  %v42_v30 = vand.u32 2147483647, %v38_v20  ;;  %v50_v32 = vsub.f32 %v46_v23, %v18_v2  ;;  %v51_v33 = vsub.f32 %v47_v28, %v19_v5 }
   0x8   :  { %79 = vst [vmem:[%s237_s4 + $0x10] sm:$0xff] %v31_v19  ;;  %v43_v31 = vand.u32 2147483647, %v39_v21  ;;  %100 = vst [vmem:[%s237_s4 + $0x20] sm:$0xff] %v41_v25  ;;  %v44_v34 = vand.u32 2147483647, %v40_v26  ;;  %v65_v35 = vmin.f32 %v29_v12, %v41_v25  ;;  %v52_v37 = vsub.f32 %v48_v29, %v20_v9 }
   0x9   :  { %80 = vst [vmem:[%s237_s4 + $0x18] sm:$0xff] %v32_v24  ;;  %v53_v36 = vand.u32 2147483647, %v49_v27  ;;  %101 = vst [vmem:[%s237_s4 + $0x28] sm:$0xff] %v42_v30  ;;  %v66_v38 = vmin.f32 %v30_v18, %v42_v30  ;;  %v54_v40 = vand.u32 2147483647, %v50_v32 }
   0xa   :  { %102 = vst [vmem:[%s237_s4 + $0x30] sm:$0xff] %v43_v31  ;;  %v67_v39 = vmin.f32 %v31_v19, %v43_v31  ;;  %v55_v41 = vand.u32 2147483647, %v51_v33  ;;  %103 = vst [vmem:[%s237_s4 + $0x38] sm:$0xff] %v44_v34  ;;  %v68_v42 = vmin.f32 %v32_v24, %v44_v34  ;;  %v56_v43 = vand.u32 2147483647, %v52_v37 }
   0xb   :  { %104 = vst [vmem:[%s237_s4 + $0x40] sm:$0xff] %v65_v35  ;;  %108 = vst [vmem:[%s237_s4 + $0x60] sm:$0xff] %v53_v36 }
   0xc   :  { %105 = vst [vmem:[%s237_s4 + $0x48] sm:$0xff] %v66_v38  ;;  %106 = vst [vmem:[%s237_s4 + $0x50] sm:$0xff] %v67_v39 }
   0xd   :  { %109 = vst [vmem:[%s237_s4 + $0x68] sm:$0xff] %v54_v40  ;;  %110 = vst [vmem:[%s237_s4 + $0x70] sm:$0xff] %v55_v41 }
   0xe   :  { %107 = vst [vmem:[%s237_s4 + $0x58] sm:$0xff] %v68_v42  ;;  %111 = vst [vmem:[%s237_s4 + $0x78] sm:$0xff] %v56_v43 }

</bundles_post_ra>
